<compile_context>
chip_gen: v5e
topology: v5e:2x2
jax: 0.10.0
libtpu: 0.0.40
codegen_flags: <defaults>
</compile_context>

<pallas_src>
import functools

import jax
import jax.numpy as jnp
from jax import lax
from jax.experimental import pallas as pl
from jax.experimental.pallas import tpu as pltpu


def _round_up(a: int, b: int) -> int:
    return (a + b - 1) // b * b


def _vmem_capacity_bytes() -> int:
    try:
        return int(pltpu.get_tpu_info().vmem_capacity_bytes)
    except Exception:
        return 64 << 20  # conservative fallback (v7x per-TC VMEM)


def _lm_head_softcap_kernel(x_ref, w_ref, o_ref, *, softcap, w_is_dxv):
    # x_ref: [tm, D]; w_ref: [tn, D] (PyTorch layout) or [D, tn] (pre-transposed).
    if w_is_dxv:
        dims = (((1,), (0,)), ((), ()))
    else:
        dims = (((1,), (1,)), ((), ()))
    logits = lax.dot_general(
        x_ref[...], w_ref[...], dimension_numbers=dims,
        preferred_element_type=jnp.float32,
    )  # [tm, tn] f32
    if softcap is not None:
        cap = float(softcap)
        logits = jnp.tanh(logits * (1.0 / cap)) * cap  # trace-time-folded recip
    o_ref[...] = logits.astype(o_ref.dtype)


def gemma2_output_layer(
    hidden_states,
    lm_head_weight,
    final_logit_softcapping,
    *,
    tm=None,
    tn=None,
    grid_order=None,   # None (auto) | "mn" (vocab innermost) | "nm" (rows innermost)
    out_dtype=None,
):
    """hidden_states: [..., D]; lm_head_weight: [V, D] (nn.Linear) or [D, V].

    Returns softcapped logits [..., V] in hidden_states.dtype (or out_dtype).
    For best performance pass the weight already in its streaming dtype
    (e.g. bf16, cast ONCE at model-load time — never per call).
    """
    orig_shape = hidden_states.shape
    D = orig_shape[-1]
    x = hidden_states.reshape(-1, D)            # free reshape (merge leading dims)
    M = x.shape[0]

    # Weight layout detection: [V, D] (default / PyTorch) or [D, V] (pre-transposed).
    ws = lm_head_weight.shape
    if ws[0] == D and ws[1] == D:
        w_is_dxv = False
    elif ws[1] == D:
        w_is_dxv = False
    elif ws[0] == D:
        w_is_dxv = True
    else:
        raise ValueError(f"weight shape {ws} incompatible with dim {D}")
    V = ws[1] if w_is_dxv else ws[0]
    N = V

    out_dtype = hidden_states.dtype if out_dtype is None else jnp.dtype(out_dtype)
    x_item = jnp.dtype(x.dtype).itemsize
    w_item = jnp.dtype(lm_head_weight.dtype).itemsize
    o_item = jnp.dtype(out_dtype).itemsize

    # Native sublane packing for the activation row tile: 8 (4B) / 16 (2B) / 32 (1B).
    sub = max(8, 32 // x_item)

    cap_bytes = _vmem_capacity_bytes()
    budget = max(cap_bytes - (16 << 20), 16 << 20)   # leave real headroom

    # ---- tile selection (scaled to the VMEM budget, never clamped below need) ----
    m_full = _round_up(M, sub)
    if tm is None:
        tm = m_full if M <= 1024 else 512
    tm_eff = max(sub, min(_round_up(int(tm), sub), m_full))

    if tn is None:
        tn = 4096 if cap_bytes >= (96 << 20) else 2048  # big on v5e/v6e, tighter on v7x
    if N >= 128:
        n_cap = _round_up(N, 128)
        tn_eff = max(128, min((int(tn) // 128) * 128, n_cap))
    else:
        tn_eff = N  # full-dim block (lane dim < 128)

    def _needed(tm_, tn_, w_bufs):
        return (2 * tm_ * D * x_item          # activation double-buffer
                + w_bufs * tn_ * D * w_item   # weight buffers
                + 2 * tm_ * tn_ * o_item      # output double-buffer
                + tm_ * tn_ * 4)              # f32 logits intermediate

    while True:
        m_tiles = pl.cdiv(M, tm_eff)
        n_tiles = pl.cdiv(N, tn_eff)
        w_bufs = 3 if (m_tiles == 1 and n_tiles >= 3) else 2  # deeper pipe for decode
        if _needed(tm_eff, tn_eff, w_bufs) <= budget:
            break
        if tn_eff > 128 and N >= 128:
            tn_eff = max(128, (tn_eff // 2) // 128 * 128)
        elif tm_eff > sub:
            tm_eff = max(sub, (tm_eff // 2) // sub * sub)
        else:
            break

    # ---- grid-order selection: minimize estimated HBM traffic ----
    x_stream = M * D * x_item
    w_stream = V * D * w_item
    if grid_order is None:
        traffic_mn = x_stream + m_tiles * w_stream   # vocab innermost (decode)
        traffic_nm = w_stream + n_tiles * x_stream   # rows innermost (prefill)
        grid_order = "mn" if traffic_mn <= traffic_nm else "nm"

    w_block = (D, tn_eff) if w_is_dxv else (tn_eff, D)
    if grid_order == "mn":
        grid = (m_tiles, n_tiles)
        x_index = lambda i, j: (i, 0)
        w_index = (lambda i, j: (0, j)) if w_is_dxv else (lambda i, j: (j, 0))
        o_index = lambda i, j: (i, j)
        bytes_accessed = x_stream + m_tiles * w_stream + M * N * o_item
    else:
        grid = (n_tiles, m_tiles)
        x_index = lambda i, j: (j, 0)
        w_index = (lambda i, j: (0, i)) if w_is_dxv else (lambda i, j: (i, 0))
        o_index = lambda i, j: (j, i)
        bytes_accessed = n_tiles * x_stream + w_stream + M * N * o_item

    x_spec = pl.BlockSpec((tm_eff, D), x_index)
    if w_bufs == 3:
        w_spec = pl.BlockSpec(w_block, w_index, pipeline_mode=pl.Buffered(3))
    else:
        w_spec = pl.BlockSpec(w_block, w_index)
    o_spec = pl.BlockSpec((tm_eff, tn_eff), o_index)

    need = _needed(tm_eff, tn_eff, w_bufs)
    vmem_limit = int(min(max(need + (8 << 20), 32 << 20), cap_bytes - (8 << 20)))

    kernel = functools.partial(
        _lm_head_softcap_kernel,
        softcap=final_logit_softcapping,
        w_is_dxv=w_is_dxv,
    )

    out = pl.pallas_call(
        kernel,
        out_shape=jax.ShapeDtypeStruct((M, N), out_dtype),   # exact shape: no slice
        grid_spec=pltpu.PrefetchScalarGridSpec(
            num_scalar_prefetch=0,
            grid=grid,
            in_specs=[x_spec, w_spec],
            out_specs=o_spec,
        ),
        compiler_params=pltpu.CompilerParams(
            dimension_semantics=("parallel", "parallel"),
            vmem_limit_bytes=vmem_limit,
        ),
        cost_estimate=pl.CostEstimate(
            flops=2 * M * N * D,
            transcendentals=(M * N) if final_logit_softcapping is not None else 0,
            bytes_accessed=int(bytes_accessed),
        ),
    )(x, lm_head_weight)

    return out.reshape(orig_shape[:-1] + (N,))


if __name__ == "__main__":
    key = jax.random.PRNGKey(0)
    k1, k2, k3, k4 = jax.random.split(key, 4)
    softcap = 30.0

    def ref_fn(h, w, cap):
        logits = jnp.einsum(
            "...d,vd->...v", h.astype(jnp.float32), w.astype(jnp.float32)
        )
        if cap is not None:
            logits = jnp.tanh(logits / cap) * cap
        return logits

    # --- Test 1: clean small shapes, f32, auto (decode-style "mn") order ---
    B, S, Dm, Vv = 2, 8, 32, 256
    h = jax.random.normal(k1, (B, S, Dm), dtype=jnp.float32)
    w = jax.random.normal(k2, (Vv, Dm), dtype=jnp.float32) * 0.02  # nn.Linear [V, D]
    out = gemma2_output_layer(h, w, softcap)
    jax.block_until_ready(out)
    ref = ref_fn(h, w, softcap)
    assert out.shape == (B, S, Vv)
    assert jnp.allclose(out, ref, atol=1e-5, rtol=1e-5)

    # Prefill-style ("nm": rows innermost, weight resident) grid order.
    out_nm = gemma2_output_layer(h, w, softcap, tm=8, tn=128, grid_order="nm")
    assert jnp.allclose(out_nm, ref, atol=1e-5, rtol=1e-5)

    # softcap=None branch (module allows it).
    out_nc = gemma2_output_layer(h, w, None)
    assert jnp.allclose(out_nc, ref_fn(h, w, None), atol=1e-5, rtol=1e-5)

    # --- Test 2: ragged shapes (rows < tile, vocab not a multiple of 128) ---
    B2, S2, V2 = 2, 3, 200
    h2 = jax.random.normal(k3, (B2, S2, Dm), dtype=jnp.float32)
    w2 = jax.random.normal(k4, (V2, Dm), dtype=jnp.float32) * 0.02
    out2 = gemma2_output_layer(h2, w2, softcap, tm=8, tn=128)
    assert out2.shape == (B2, S2, V2)
    assert jnp.allclose(out2, ref_fn(h2, w2, softcap), atol=1e-5, rtol=1e-5)

    # --- Test 3: bf16 streaming, decode-style multi-buffered weight path ---
    B3, S3, V3 = 2, 8, 512
    h3 = jax.random.normal(k1, (B3, S3, Dm), dtype=jnp.float32).astype(jnp.bfloat16)
    w3 = (jax.random.normal(k2, (V3, Dm), dtype=jnp.float32) * 0.02).astype(jnp.bfloat16)
    out3 = gemma2_output_layer(h3, w3, softcap, tn=128)  # n_tiles=4 -> Buffered(3)
    assert out3.shape == (B3, S3, V3) and out3.dtype == jnp.bfloat16
    ref3 = ref_fn(h3, w3, softcap)
    assert jnp.allclose(out3.astype(jnp.float32), ref3, atol=5e-2, rtol=5e-2)

    print("KERNEL_OK")
</pallas_src>

<mosaic_0001>
module attributes {stable_mosaic.version = 11 : i64} {
  func.func @_lm_head_softcap_kernel(%arg0: i32, %arg1: i32, %arg2: memref<16x32xf32, #tpu.memory_space<vmem>>, %arg3: memref<256x32xf32, #tpu.memory_space<vmem>>, %arg4: memref<16x256xf32, #tpu.memory_space<vmem>>) attributes {dimension_semantics = [#tpu.dimension_semantics<parallel>, #tpu.dimension_semantics<parallel>], iteration_bounds = array<i64: 1, 1>, scalar_prefetch = 0 : i64, scratch_operands = 0 : i64, tpu.core_type = #tpu.core_type<tc>, window_params = [{transform_indices = @transform_0, window_bounds = array<i64: 16, 32>}, {transform_indices = @transform_1, window_bounds = array<i64: 256, 32>}, {transform_indices = @transform_2, window_bounds = array<i64: 16, 256>}]} {
    %c0 = arith.constant 0 : index
    %c0_0 = arith.constant 0 : index
    %0 = vector.load %arg2[%c0, %c0_0] : memref<16x32xf32, #tpu.memory_space<vmem>>, vector<16x32xf32>
    %c0_1 = arith.constant 0 : index
    %c0_2 = arith.constant 0 : index
    %1 = vector.load %arg3[%c0_1, %c0_2] : memref<256x32xf32, #tpu.memory_space<vmem>>, vector<256x32xf32>
    %cst = arith.constant dense<0.000000e+00> : vector<16x256xf32>
    %2 = tpu.matmul %0, %1, %cst {dimension_numbers = #tpu.dot_dimension_numbers<[1], [1], [0], [0], [0, 0, 1, 0], [], []>} : vector<16x32xf32>, vector<256x32xf32>, vector<16x256xf32> -> vector<16x256xf32>
    %cst_3 = arith.constant 0.0333333351 : f32
    %3 = vector.broadcast %cst_3 : f32 to vector<16x256xf32>
    %4 = arith.mulf %2, %3 : vector<16x256xf32>
    %5 = math.tanh %4 : vector<16x256xf32>
    %cst_4 = arith.constant 3.000000e+01 : f32
    %6 = vector.broadcast %cst_4 : f32 to vector<16x256xf32>
    %7 = arith.mulf %5, %6 : vector<16x256xf32>
    %c0_5 = arith.constant 0 : index
    %c0_6 = arith.constant 0 : index
    %8 = vector.load %arg4[%c0_5, %c0_6] : memref<16x256xf32, #tpu.memory_space<vmem>>, vector<16x256xf32>
    tpu.vector_store %arg4[%c0_5, %c0_6], %7 {strides = array<i32>} : memref<16x256xf32, #tpu.memory_space<vmem>>, vector<16x256xf32>,
    return
  }
  func.func @transform_0(%arg0: i32, %arg1: i32) -> (i32, i32) {
    %c0_i32 = arith.constant 0 : i32
    %c0_i32_0 = arith.constant 0 : i32
    return %arg0, %c0_i32 : i32, i32
  }
  func.func @transform_1(%arg0: i32, %arg1: i32) -> (i32, i32) {
    %c0_i32 = arith.constant 0 : i32
    %c0_i32_0 = arith.constant 0 : i32
    return %arg1, %c0_i32 : i32, i32
  }
  func.func @transform_2(%arg0: i32, %arg1: i32) -> (i32, i32) {
    %c0_i32 = arith.constant 0 : i32
    return %arg0, %arg1 : i32, i32
  }
}

</mosaic_0001>

<bundles_post_ra>
// kernel: tpu_custom_call.1
= control target key start
LH: loop header
LB: loop body
LE: loop exit
PB: predicated region body
PF: predicated region fallthrough
CT: control target
= control target key end

     0   :  { %vm46_vm0 = vcmask 261120   ;;  %s525_s0 = inlined_call_operand.vmem [shape: f32[16,32], index: 0, kind: input, shape index: {}]   ;;  %s526_s1 = inlined_call_operand.vmem [shape: f32[256,32], index: 1, kind: input, shape index: {}]   ;;  %s527_s2 = inlined_call_operand.hbm [shape: f32[16,256], index: 2, kind: output, shape index: {}]  }
   0x1   :  { %v29_v0 = vld [vmem:[%s526_s1 + $0x78] sm:$0xff]  ;;  %v28_v2 = vld [vmem:[%s526_s1 + $0x70] sm:$0xff]  ;;  %v27_v4 = vld [vmem:[%s526_s1 + $0x68] sm:$0xff] }
   0x2   :  { %v45_v1 = vld [vmem:[%s526_s1 + $0xf8] sm:$0xff]  ;;  %265 = vmatpush.xpose.msk.msra.mxu2 %vm46_vm0, %v29_v0  ;;  %v44_v3 = vld [vmem:[%s526_s1 + $0xf0] sm:$0xff]  ;;  %229 = vmatpush.xpose.msk.msra.mxu0 %vm46_vm0, %v29_v0  ;;  %v43_v5 = vld [vmem:[%s526_s1 + $0xe8] sm:$0xff] }
   0x3   :  { %281 = vmatpush.xpose.msk.msra.mxu3 %vm46_vm0, %v45_v1  ;;  %247 = vmatpush.xpose.msk.msra.mxu1 %vm46_vm0, %v45_v1 }
   0x6   :  { %266 = vmatpush.xpose.msk.msra.mxu2 %vm46_vm0, %v28_v2  ;;  %230 = vmatpush.xpose.msk.msra.mxu0 %vm46_vm0, %v28_v2 }
   0x7   :  { %282 = vmatpush.xpose.msk.msra.mxu3 %vm46_vm0, %v44_v3  ;;  %248 = vmatpush.xpose.msk.msra.mxu1 %vm46_vm0, %v44_v3 }
   0x8   :  { %7 = vsyncpa [#allocation3], 0  ;;  %v26_v6 = vld [vmem:[%s526_s1 + $0x60] sm:$0xff]  ;;  %v25_v8 = vld [vmem:[%s526_s1 + $0x58] sm:$0xff]  ;;  %s217_s23 = sshll.u32 %s527_s2, 4  ;;  %s335_s24 = smov 256   ;;  %s218_s23 = int_to_ptr.hbm [resolvable:$true] %s217_s23 }
   0x9   :  { %v42_v7 = vld [vmem:[%s526_s1 + $0xe0] sm:$0xff]  ;;  %v41_v9 = vld [vmem:[%s526_s1 + $0xd8] sm:$0xff]  ;;  %v24_v10 = vld [vmem:[%s526_s1 + $0x50] sm:$0xff]  ;;  %s336_s25 = smov 16  }
   0xa   :  { %267 = vmatpush.xpose.msk.msra.mxu2 %vm46_vm0, %v27_v4  ;;  %231 = vmatpush.xpose.msk.msra.mxu0 %vm46_vm0, %v27_v4  ;;  %v40_v11 = vld [vmem:[%s526_s1 + $0xd0] sm:$0xff]  ;;  %v23_v12 = vld [vmem:[%s526_s1 + $0x48] sm:$0xff]  ;;  %v22_v14 = vld [vmem:[%s526_s1 + $0x40] sm:$0xff] }
   0xb   :  { %283 = vmatpush.xpose.msk.msra.mxu3 %vm46_vm0, %v43_v5  ;;  %249 = vmatpush.xpose.msk.msra.mxu1 %vm46_vm0, %v43_v5  ;;  %v39_v13 = vld [vmem:[%s526_s1 + $0xc8] sm:$0xff]  ;;  %v38_v15 = vld [vmem:[%s526_s1 + $0xc0] sm:$0xff]  ;;  %v21_v16 = vld [vmem:[%s526_s1 + $0x38] sm:$0xff] }
   0xc   :  { %v37_v17 = vld [vmem:[%s526_s1 + $0xb8] sm:$0xff]  ;;  %v20_v18 = vld [vmem:[%s526_s1 + $0x30] sm:$0xff]  ;;  %v19_v20 = vld [vmem:[%s526_s1 + $0x28] sm:$0xff] }
   0xd   :  { %v36_v19 = vld [vmem:[%s526_s1 + $0xb0] sm:$0xff]  ;;  %v35_v21 = vld [vmem:[%s526_s1 + $0xa8] sm:$0xff]  ;;  %v18_v22 = vld [vmem:[%s526_s1 + $0x20] sm:$0xff] }
   0xe   :  { %268 = vmatpush.xpose.msk.msra.mxu2 %vm46_vm0, %v26_v6  ;;  %232 = vmatpush.xpose.msk.msra.mxu0 %vm46_vm0, %v26_v6  ;;  %v34_v23 = vld [vmem:[%s526_s1 + $0xa0] sm:$0xff]  ;;  %v17_v24 = vld [vmem:[%s526_s1 + $0x18] sm:$0xff]  ;;  %v16_v26 = vld [vmem:[%s526_s1 + $0x10] sm:$0xff] }
   0xf   :  { %284 = vmatpush.xpose.msk.msra.mxu3 %vm46_vm0, %v42_v7  ;;  %250 = vmatpush.xpose.msk.msra.mxu1 %vm46_vm0, %v42_v7  ;;  %v33_v25 = vld [vmem:[%s526_s1 + $0x98] sm:$0xff]  ;;  %v32_v27 = vld [vmem:[%s526_s1 + $0x90] sm:$0xff]  ;;  %v15_v28 = vld [vmem:[%s526_s1 + $0x8] sm:$0xff] }
  0x10   :  { %v31_v29 = vld [vmem:[%s526_s1 + $0x88] sm:$0xff]  ;;  %v14_v30 = vld [vmem:[%s526_s1] sm:$0xff] }
  0x11   :  { %v30_v31 = vld [vmem:[%s526_s1 + $0x80] sm:$0xff]  ;;  %v13_v32 = vld [vmem:[%s525_s0 + $0x8] sm:$0xff] }
  0x12   :  { %269 = vmatpush.xpose.msk.msra.mxu2 %vm46_vm0, %v25_v8  ;;  %233 = vmatpush.xpose.msk.msra.mxu0 %vm46_vm0, %v25_v8  ;;  %v12_v33 = vld [vmem:[%s525_s0] sm:$0xff]  ;;  %s334_s0 = smov [#allocation2]  }
  0x13   :  { %285 = vmatpush.xpose.msk.msra.mxu3 %vm46_vm0, %v41_v9  ;;  %251 = vmatpush.xpose.msk.msra.mxu1 %vm46_vm0, %v41_v9  ;;  %s215_s1 = sshll.u32 %s334_s0, 4  ;;  %s216_s1 = int_to_ptr.vmem [resolvable:$true] %s215_s1 }
  0x16   :  { %270 = vmatpush.xpose.msk.msra.mxu2 %vm46_vm0, %v24_v10  ;;  %234 = vmatpush.xpose.msk.msra.mxu0 %vm46_vm0, %v24_v10 }
  0x17   :  { %286 = vmatpush.xpose.msk.msra.mxu3 %vm46_vm0, %v40_v11  ;;  %252 = vmatpush.xpose.msk.msra.mxu1 %vm46_vm0, %v40_v11 }
  0x1a   :  { %271 = vmatpush.xpose.msk.msra.mxu2 %vm46_vm0, %v23_v12  ;;  %235 = vmatpush.xpose.msk.msra.mxu0 %vm46_vm0, %v23_v12 }
  0x1b   :  { %287 = vmatpush.xpose.msk.msra.mxu3 %vm46_vm0, %v39_v13  ;;  %253 = vmatpush.xpose.msk.msra.mxu1 %vm46_vm0, %v39_v13 }
  0x1e   :  { %272 = vmatpush.xpose.msk.msra.mxu2 %vm46_vm0, %v22_v14  ;;  %236 = vmatpush.xpose.msk.msra.mxu0 %vm46_vm0, %v22_v14 }
  0x1f   :  { %288 = vmatpush.xpose.msk.msra.mxu3 %vm46_vm0, %v38_v15  ;;  %254 = vmatpush.xpose.msk.msra.mxu1 %vm46_vm0, %v38_v15 }
  0x22   :  { %273 = vmatpush.xpose.msk.msra.mxu2 %vm46_vm0, %v21_v16  ;;  %237 = vmatpush.xpose.msk.msra.mxu0 %vm46_vm0, %v21_v16 }
  0x23   :  { %289 = vmatpush.xpose.msk.msra.mxu3 %vm46_vm0, %v37_v17  ;;  %255 = vmatpush.xpose.msk.msra.mxu1 %vm46_vm0, %v37_v17 }
  0x26   :  { %274 = vmatpush.xpose.msk.msra.mxu2 %vm46_vm0, %v20_v18  ;;  %238 = vmatpush.xpose.msk.msra.mxu0 %vm46_vm0, %v20_v18 }
  0x27   :  { %290 = vmatpush.xpose.msk.msra.mxu3 %vm46_vm0, %v36_v19  ;;  %256 = vmatpush.xpose.msk.msra.mxu1 %vm46_vm0, %v36_v19 }
  0x2a   :  { %275 = vmatpush.xpose.msk.msra.mxu2 %vm46_vm0, %v19_v20  ;;  %239 = vmatpush.xpose.msk.msra.mxu0 %vm46_vm0, %v19_v20 }
  0x2b   :  { %291 = vmatpush.xpose.msk.msra.mxu3 %vm46_vm0, %v35_v21  ;;  %257 = vmatpush.xpose.msk.msra.mxu1 %vm46_vm0, %v35_v21 }
  0x2e   :  { %276 = vmatpush.xpose.msk.msra.mxu2 %vm46_vm0, %v18_v22  ;;  %240 = vmatpush.xpose.msk.msra.mxu0 %vm46_vm0, %v18_v22 }
  0x2f   :  { %292 = vmatpush.xpose.msk.msra.mxu3 %vm46_vm0, %v34_v23  ;;  %258 = vmatpush.xpose.msk.msra.mxu1 %vm46_vm0, %v34_v23 }
  0x32   :  { %277 = vmatpush.xpose.msk.msra.mxu2 %vm46_vm0, %v17_v24  ;;  %241 = vmatpush.xpose.msk.msra.mxu0 %vm46_vm0, %v17_v24 }
  0x33   :  { %293 = vmatpush.xpose.msk.msra.mxu3 %vm46_vm0, %v33_v25  ;;  %259 = vmatpush.xpose.msk.msra.mxu1 %vm46_vm0, %v33_v25 }
  0x36   :  { %278 = vmatpush.xpose.msk.msra.mxu2 %vm46_vm0, %v16_v26  ;;  %242 = vmatpush.xpose.msk.msra.mxu0 %vm46_vm0, %v16_v26 }
  0x37   :  { %294 = vmatpush.xpose.msk.msra.mxu3 %vm46_vm0, %v32_v27  ;;  %260 = vmatpush.xpose.msk.msra.mxu1 %vm46_vm0, %v32_v27 }
  0x3a   :  { %279 = vmatpush.xpose.msk.msra.mxu2 %vm46_vm0, %v15_v28  ;;  %243 = vmatpush.xpose.msk.msra.mxu0 %vm46_vm0, %v15_v28 }
  0x3b   :  { %295 = vmatpush.xpose.msk.msra.mxu3 %vm46_vm0, %v31_v29  ;;  %261 = vmatpush.xpose.msk.msra.mxu1 %vm46_vm0, %v31_v29 }
  0x3e   :  { %280 = vmatpush.xpose.msk.msra.mxu2 %vm46_vm0, %v14_v30  ;;  %244 = vmatpush.xpose.msk.msra.mxu0 %vm46_vm0, %v14_v30 }
  0x3f   :  { %296 = vmatpush.xpose.msk.msra.mxu3 %vm46_vm0, %v30_v31  ;;  %262 = vmatpush.xpose.msk.msra.mxu1 %vm46_vm0, %v30_v31 }
  0x41   :  { %246 = vmatmul.msk.f32.vlgmr.msra.gmra.mxu2 %vm46_vm0, %v13_v32  ;;  %245 = vmatmul.msk.f32.vlgmr.msra.gmra.mxu0 %vm46_vm0, %v12_v33 }
  0x42   :  { %264 = vmatmul.msk.f32.vlgmr.msra.gmra.mxu3 %vm46_vm0, %v13_v32  ;;  %263 = vmatmul.msk.f32.vlgmr.msra.gmra.mxu1 %vm46_vm0, %v12_v33 }
  0xbe   :  { %v166_v34 = vpop.f32.mrf.mxu0 }
  0xbf   :  { %v189_v35 = vpop.f32.mrf.mxu1  ;;  %v195_v36 = vmul.f32 0.033333335, %v166_v34 }
  0xc0   :  { %v196_v37 = vmul.f32 0.033333335, %v189_v35 }
  0xc1   :  { %300 = vtanh.f32 %v195_v36 }
  0xc2   :  { %302 = vtanh.f32 %v196_v37 }
  0xc4   :  { %v169_v38 = vpop.f32.mrf.mxu2 }
  0xc5   :  { %v192_v39 = vpop.f32.mrf.mxu3  ;;  %v197_v40 = vmul.f32 0.033333335, %v169_v38 }
  0xc6   :  { %v198_v41 = vmul.f32 0.033333335, %v192_v39 }
  0xc7   :  { %304 = vtanh.f32 %v197_v40  ;;  %v301_v42 = vpop.eup %300 }
  0xc8   :  { %306 = vtanh.f32 %v198_v41  ;;  %v303_v43 = vpop.eup %302  ;;  %v203_v44 = vmul.f32 30.0, %v301_v42 }
  0xc9   :  { %v204_v45 = vmul.f32 30.0, %v303_v43 }
  0xca   :  { %207 = vst [vmem:[#allocation2] sm:$0xff] %v203_v44 }
  0xcb   :  { %208 = vst [vmem:[#allocation2 + $0x8] sm:$0xff] %v204_v45 }
  0xcd   :  { %v305_v46 = vpop.eup %304 }
  0xce   :  { %v307_v47 = vpop.eup %306  ;;  %v205_v48 = vmul.f32 30.0, %v305_v46 }
  0xcf   :  { %v206_v49 = vmul.f32 30.0, %v307_v47 }
  0xd0   :  { %209 = vst [vmem:[#allocation2 + $0x10] sm:$0xff] %v205_v48 }
  0xd1   :  { %210 = vst [vmem:[#allocation2 + $0x18] sm:$0xff] %v206_v49 }
  0xd2   :  { %223 = dma.vmem_to_hbm [thread:$0]  %s216_s1, 512, %s218_s23, [#allocation3], %s335_s24, %s335_s24, %s336_s25  }
  0xd3   :  { %332 = dma.done.wait [#allocation3], 512  }
  0xd4   :  { %333 = vsyncadd [#allocation3], 4294966784 }
  0xd5   :  { %228 = vsyncpa [#allocation3], 1 }

</bundles_post_ra>
